<compile_context>
chip_gen: v7x
topology: tpu7x:2x2x1
jax: 0.10.0
libtpu: 0.0.40
codegen_flags: <defaults>
</compile_context>

<pallas_src>
import functools

import jax
import jax.numpy as jnp
from jax.experimental import pallas as pl
from jax.experimental.pallas import tpu as pltpu


_LANE = 256          # cumsum block width: fills a 256x256 MXU tile on v6e/v7x
                     # (two pushes on the v5e 128x128 MXU — still fine).
_CHUNK_ROWS = 256    # rows of the sorted vector per kernel-2 grid step
                     # (chunk = 256*256 = 64K elems -> ~0.4 MB of blocks, bounded).
_VMEM_LIMIT = 48 * 1024 * 1024   # explicit scoped-VMEM limit (< v7x 64 MiB physical)


# ---------------------------------------------------------------------------
# Kernel 1: one-hot mask + max-margin errors (elementwise, tiled over N x HW)
# ---------------------------------------------------------------------------
def _errmask_kernel(x_ref, t_ref, err_ref, mask_ref):
    x = x_ref[...]                                    # (1, C, THW) f32
    t = t_ref[...]                                    # (1, 1, THW) i32
    c_iota = jax.lax.broadcasted_iota(jnp.int32, x.shape, 1)     # channel idx
    is_pos = c_iota == jnp.broadcast_to(t, x.shape)   # scatter_(1, targets, 1)
    # err = 1 - (2*mask - 1) * x  ==  where(mask, 1 - x, 1 + x)
    err_ref[...] = jnp.where(is_pos, 1.0 - x, 1.0 + x)
    # mask is exactly 0/1 -> bf16 is lossless and halves the writeback
    mask_ref[...] = is_pos.astype(jnp.bfloat16)


def _pick_hw_tile(hw, cap=16384):
    """Largest multiple-of-128 divisor of hw that is <= cap (else full hw)."""
    if hw % 128 != 0 or hw <= cap:
        return hw
    t = cap - (cap % 128)
    while hw % t != 0:
        t -= 128
    return t if t > 0 else hw


def _compute_err_mask(inputs_nchw, targets_nhw):
    N, C, H, W = inputs_nchw.shape
    HW = H * W
    x = inputs_nchw.reshape(N, C, HW).astype(jnp.float32)
    t = targets_nhw.reshape(N, 1, HW).astype(jnp.int32)

    thw = _pick_hw_tile(HW)
    grid = (N, HW // thw)

    out_shapes = (
        jax.ShapeDtypeStruct((N, C, HW), jnp.float32),
        jax.ShapeDtypeStruct((N, C, HW), jnp.bfloat16),
    )
    errs, masks = pl.pallas_call(
        _errmask_kernel,
        out_shape=out_shapes,
        grid_spec=pltpu.PrefetchScalarGridSpec(
            num_scalar_prefetch=0,
            grid=grid,
            in_specs=[
                pl.BlockSpec((1, C, thw), lambda n, h: (n, 0, h)),
                pl.BlockSpec((1, 1, thw), lambda n, h: (n, 0, h)),
            ],
            out_specs=[
                pl.BlockSpec((1, C, thw), lambda n, h: (n, 0, h)),
                pl.BlockSpec((1, C, thw), lambda n, h: (n, 0, h)),
            ],
        ),
        compiler_params=pltpu.CompilerParams(
            dimension_semantics=("parallel", "parallel"),
            vmem_limit_bytes=_VMEM_LIMIT),
    )(x, t)
    return errs, masks


# ---------------------------------------------------------------------------
# Kernel 2: per-sample Lovasz gradient, chunked blocked cumsum + carried prefix
# ---------------------------------------------------------------------------
def _lovasz_kernel(e_ref, l_ref, tri_ref, pre_ref, out_ref, carry_ref, *,
                   s_total, rows, lane):
    c = pl.program_id(1)                              # chunk index (sequential)

    @pl.when(c == 0)
    def _():                                          # new sample: reset state
        carry_ref[...] = jnp.zeros_like(carry_ref)
        out_ref[...] = jnp.zeros_like(out_ref)

    e = e_ref[0]                                      # (rows, lane) f32, sorted desc
    l = l_ref[0]                                      # (rows, lane) bf16 labels (0/1)

    # Intra-row inclusive cumsum on the MXU: tri[j,i] = (j <= i).
    cs_row = jnp.dot(l, tri_ref[...], preferred_element_type=jnp.float32)
    # Per-row totals come for free from the cumsum's last lane (exact, <= lane).
    rowsum = cs_row[:, lane - 1:lane]                                 # (rows, 1)

    # Within-chunk exclusive row prefix: tiny (rows,rows)@(rows,128) matvec
    # (rhs kept 128 lanes wide for a safe MXU lowering; cost << main cumsum).
    rs_b = jnp.broadcast_to(rowsum, (rows, 128)).astype(jnp.bfloat16)
    row_carry = jnp.dot(pre_ref[...], rs_b,
                        preferred_element_type=jnp.float32)[:, :1]   # (rows, 1)

    carry_in = carry_ref[...]                          # (1,1): positives in prior chunks
    cs = cs_row + (row_carry + carry_in)               # global inclusive cumsum

    # Global 1-based positions: one lane iota + per-row/chunk base (cheap ramp).
    lane_pos = jax.lax.broadcasted_iota(jnp.int32, (rows, lane), 1).astype(jnp.float32)
    row_base = (jax.lax.broadcasted_iota(jnp.int32, (rows, 1), 0) * lane
                ).astype(jnp.float32)
    offset = (c * (rows * lane) + 1).astype(jnp.float32)
    pos = lane_pos + (row_base + offset)

    # Lovasz gradient with a single divide per element:
    #   inter = S - cs ; union = inter + pos ; union_prev = union + l - 1
    #   grad  = iou - iou_prev = (l*pos + inter) / (union * union_prev)   (pos > 1)
    #   grad  = iou            =  union_prev     / (union * union_prev)   (pos == 1)
    l_f = l.astype(jnp.float32)
    inter = s_total - cs
    union = inter + pos
    union_prev = union + (l_f - 1.0)
    num = jnp.where(pos <= 1.0, union_prev, l_f * pos + inter)
    grad = num / (union * union_prev)

    partial = jnp.sum(jnp.maximum(e, 0.0) * grad)      # dot(relu(errors), grad) chunk
    out_ref[...] = out_ref[...] + partial
    carry_ref[...] = carry_in + jnp.sum(rowsum, keepdims=True)


def _lovasz_per_sample(errors_sorted, labels_sorted, s_total):
    N, P = errors_sorted.shape
    L = _LANE
    r_needed = -(-P // L)
    if r_needed <= _CHUNK_ROWS:
        rows = max(8, ((r_needed + 7) // 8) * 8)       # single chunk, >= 8 rows
        n_chunks = 1
    else:
        rows = _CHUNK_ROWS
        n_chunks = -(-r_needed // rows)
    r_total = rows * n_chunks
    pad = r_total * L - P
    if pad:
        # padded tail (appended after the sort): label 0, error 0 -> cumsums for
        # real elements unchanged, relu(err)*grad == 0 contribution.
        errors_sorted = jnp.pad(errors_sorted, ((0, 0), (0, pad)))
        labels_sorted = jnp.pad(labels_sorted, ((0, 0), (0, pad)))

    e3 = errors_sorted.reshape(N, r_total, L).astype(jnp.float32)
    l3 = labels_sorted.reshape(N, r_total, L).astype(jnp.bfloat16)

    # Small triangular tiles, DMA'd once and kept resident (constant index_map).
    # bf16 with f32 MXU accumulation keeps the 0/1 cumsums exact.
    idx_l = jnp.arange(L, dtype=jnp.int32)
    tri = (idx_l[:, None] <= idx_l[None, :]).astype(jnp.bfloat16)    # (L, L)
    idx_r = jnp.arange(rows, dtype=jnp.int32)
    pre = (idx_r[None, :] < idx_r[:, None]).astype(jnp.bfloat16)     # (rows, rows)

    kernel = functools.partial(_lovasz_kernel, s_total=float(s_total),
                               rows=rows, lane=L)
    out = pl.pallas_call(
        kernel,
        out_shape=jax.ShapeDtypeStruct((N, 1, 128), jnp.float32),
        grid_spec=pltpu.PrefetchScalarGridSpec(
            num_scalar_prefetch=0,
            grid=(N, n_chunks),
            in_specs=[
                pl.BlockSpec((1, rows, L), lambda n, c: (n, c, 0)),
                pl.BlockSpec((1, rows, L), lambda n, c: (n, c, 0)),
                pl.BlockSpec((L, L), lambda n, c: (0, 0)),       # resident tri tile
                pl.BlockSpec((rows, rows), lambda n, c: (0, 0)), # resident row prefix
            ],
            # Per-sample, lane-dense output block -> sample axis can shard across
            # the two v7x TensorCores; resident across the chunk (reduction) axis.
            out_specs=pl.BlockSpec((1, 1, 128), lambda n, c: (n, 0, 0)),
            scratch_shapes=[pltpu.VMEM((1, 1), jnp.float32)],     # carried prefix
        ),
        compiler_params=pltpu.CompilerParams(
            dimension_semantics=("parallel", "arbitrary"),
            vmem_limit_bytes=_VMEM_LIMIT),
    )(e3, l3, tri, pre)
    return out[:, 0, 0]                                # (N,) per-sample losses


# ---------------------------------------------------------------------------
# Full forward (matches Lovasz.forward)
# ---------------------------------------------------------------------------
@jax.jit
def lovasz_loss(inputs_nchw, targets_nhw):
    N, C, H, W = inputs_nchw.shape
    errs, masks = _compute_err_mask(inputs_nchw, targets_nhw)   # (N, C, HW)

    errors_flat = errs.reshape(N, -1)                  # same C,H,W flatten order
    labels_flat = masks.reshape(N, -1)

    # Descending keyed sort: one lax.sort, no argsort + two gathers.
    # TODO(synk): torch.sort has no in-kernel Pallas equivalent; XLA glue.
    neg_sorted, labels_sorted = jax.lax.sort(
        (-errors_flat, labels_flat), dimension=1, num_keys=1)
    errors_sorted = -neg_sorted

    # One-hot scatter puts exactly one positive label per pixel, so the per-sample
    # positive count S is the compile-time constant H*W (padding adds zeros only).
    per_sample = _lovasz_per_sample(errors_sorted, labels_sorted, s_total=H * W)
    return jnp.sum(per_sample) / N


# ---------------------------------------------------------------------------
# Pure-JAX reference (mirrors the PyTorch code) for validation
# ---------------------------------------------------------------------------
def lovasz_ref(inputs_nchw, targets_nhw):
    N, C, H, W = inputs_nchw.shape
    masks = jax.nn.one_hot(targets_nhw, C, axis=1, dtype=jnp.float32)
    loss = 0.0
    for n in range(N):
        m = masks[n].reshape(-1)
        x = inputs_nchw[n].reshape(-1)
        err = 1.0 - (m * 2.0 - 1.0) * x
        order = jnp.argsort(-err)
        es = err[order]
        ls = m[order]
        S = ls.sum()
        inter = S - jnp.cumsum(ls)
        union = S + jnp.cumsum(1.0 - ls)
        iou = 1.0 - inter / union
        grad = jnp.concatenate([iou[:1], iou[1:] - iou[:-1]])
        loss = loss + jnp.dot(jax.nn.relu(es), grad)
    return loss / N


if __name__ == "__main__":
    N, C, H, W = 2, 4, 16, 16
    key = jax.random.PRNGKey(0)
    k1, k2 = jax.random.split(key)
    inputs = jax.random.normal(k1, (N, C, H, W), dtype=jnp.float32)
    targets = jax.random.randint(k2, (N, H, W), 0, C, dtype=jnp.int32)

    loss = lovasz_loss(inputs, targets)
    jax.block_until_ready(loss)

    ref = lovasz_ref(inputs, targets)
    assert jnp.allclose(loss, ref, rtol=1e-4, atol=1e-5), (loss, ref)

    print("KERNEL_OK")
</pallas_src>

<mosaic_0001>
module attributes {stable_mosaic.version = 11 : i64} {
  func.func @_errmask_kernel(%arg0: i32, %arg1: i32, %arg2: memref<1x4x256xf32, #tpu.memory_space<vmem>>, %arg3: memref<1x1x256xi32, #tpu.memory_space<vmem>>, %arg4: memref<1x4x256xf32, #tpu.memory_space<vmem>>, %arg5: memref<1x4x256xbf16, #tpu.memory_space<vmem>>) attributes {dimension_semantics = [#tpu.dimension_semantics<parallel>, #tpu.dimension_semantics<parallel>], iteration_bounds = array<i64: 2, 1>, scalar_prefetch = 0 : i64, scratch_operands = 0 : i64, tpu.core_type = #tpu.core_type<tc>, window_params = [{transform_indices = @transform_0, window_bounds = array<i64: 1, 4, 256>}, {transform_indices = @transform_1, window_bounds = array<i64: 1, 1, 256>}, {transform_indices = @transform_2, window_bounds = array<i64: 1, 4, 256>}, {transform_indices = @transform_3, window_bounds = array<i64: 1, 4, 256>}]} {
    %c0 = arith.constant 0 : index
    %c0_0 = arith.constant 0 : index
    %c0_1 = arith.constant 0 : index
    %0 = vector.load %arg2[%c0, %c0_0, %c0_1] : memref<1x4x256xf32, #tpu.memory_space<vmem>>, vector<1x4x256xf32>
    %c0_2 = arith.constant 0 : index
    %c0_3 = arith.constant 0 : index
    %c0_4 = arith.constant 0 : index
    %1 = vector.load %arg3[%c0_2, %c0_3, %c0_4] : memref<1x1x256xi32, #tpu.memory_space<vmem>>, vector<1x1x256xi32>
    %2 = tpu.iota {dimensions = array<i32: 1>} : vector<1x4x256xi32>
    %3 = vector.shape_cast %1 : vector<1x1x256xi32> to vector<1x1x256xi32>
    %4 = vector.broadcast %3 : vector<1x1x256xi32> to vector<1x4x256xi32>
    %5 = arith.cmpi eq, %2, %4 : vector<1x4x256xi32>
    %cst = arith.constant 1.000000e+00 : f32
    %6 = vector.broadcast %cst : f32 to vector<1x4x256xf32>
    %7 = arith.subf %6, %0 : vector<1x4x256xf32>
    %cst_5 = arith.constant 1.000000e+00 : f32
    %8 = vector.broadcast %cst_5 : f32 to vector<1x4x256xf32>
    %9 = arith.addf %8, %0 : vector<1x4x256xf32>
    %10 = arith.select %5, %7, %9 : vector<1x4x256xi1>, vector<1x4x256xf32>
    %c0_6 = arith.constant 0 : index
    %c0_7 = arith.constant 0 : index
    %c0_8 = arith.constant 0 : index
    %11 = vector.load %arg4[%c0_6, %c0_7, %c0_8] : memref<1x4x256xf32, #tpu.memory_space<vmem>>, vector<1x4x256xf32>
    tpu.vector_store %arg4[%c0_6, %c0_7, %c0_8], %10 {strides = array<i32>} : memref<1x4x256xf32, #tpu.memory_space<vmem>>, vector<1x4x256xf32>,
    %12 = arith.extui %5 : vector<1x4x256xi1> to vector<1x4x256xi32>
    %13 = arith.sitofp %12 : vector<1x4x256xi32> to vector<1x4x256xf32>
    %14 = arith.truncf %13 : vector<1x4x256xf32> to vector<1x4x256xbf16>
    %c0_9 = arith.constant 0 : index
    %c0_10 = arith.constant 0 : index
    %c0_11 = arith.constant 0 : index
    %15 = vector.load %arg5[%c0_9, %c0_10, %c0_11] : memref<1x4x256xbf16, #tpu.memory_space<vmem>>, vector<1x4x256xbf16>
    tpu.vector_store %arg5[%c0_9, %c0_10, %c0_11], %14 {strides = array<i32>} : memref<1x4x256xbf16, #tpu.memory_space<vmem>>, vector<1x4x256xbf16>,
    return
  }
  func.func @transform_0(%arg0: i32, %arg1: i32) -> (i32, i32, i32) {
    %c0_i32 = arith.constant 0 : i32
    %c0_i32_0 = arith.constant 0 : i32
    return %arg0, %c0_i32, %arg1 : i32, i32, i32
  }
  func.func @transform_1(%arg0: i32, %arg1: i32) -> (i32, i32, i32) {
    %c0_i32 = arith.constant 0 : i32
    %c0_i32_0 = arith.constant 0 : i32
    return %arg0, %c0_i32, %arg1 : i32, i32, i32
  }
  func.func @transform_2(%arg0: i32, %arg1: i32) -> (i32, i32, i32) {
    %c0_i32 = arith.constant 0 : i32
    %c0_i32_0 = arith.constant 0 : i32
    return %arg0, %c0_i32, %arg1 : i32, i32, i32
  }
  func.func @transform_3(%arg0: i32, %arg1: i32) -> (i32, i32, i32) {
    %c0_i32 = arith.constant 0 : i32
    %c0_i32_0 = arith.constant 0 : i32
    return %arg0, %c0_i32, %arg1 : i32, i32, i32
  }
}

module attributes {stable_mosaic.version = 11 : i64} {
  func.func @_lovasz_kernel(%arg0: i32, %arg1: i32, %arg2: memref<1x8x256xf32, #tpu.memory_space<vmem>>, %arg3: memref<1x8x256xbf16, #tpu.memory_space<vmem>>, %arg4: memref<256x256xbf16, #tpu.memory_space<vmem>>, %arg5: memref<8x8xbf16, #tpu.memory_space<vmem>>, %arg6: memref<1x1x128xf32, #tpu.memory_space<vmem>>, %arg7: memref<1x1xf32, #tpu.memory_space<vmem>>) attributes {dimension_semantics = [#tpu.dimension_semantics<parallel>, #tpu.dimension_semantics<arbitrary>], iteration_bounds = array<i64: 2, 1>, scalar_prefetch = 0 : i64, scratch_operands = 1 : i64, tpu.core_type = #tpu.core_type<tc>, window_params = [{transform_indices = @transform_0, window_bounds = array<i64: 1, 8, 256>}, {transform_indices = @transform_1, window_bounds = array<i64: 1, 8, 256>}, {pipeline_mode = #tpu.pipeline_mode<synchronous>, transform_indices = @transform_2, window_bounds = array<i64: 256, 256>}, {pipeline_mode = #tpu.pipeline_mode<synchronous>, transform_indices = @transform_3, window_bounds = array<i64: 8, 8>}, {transform_indices = @transform_4, window_bounds = array<i64: 1, 1, 128>}]} {
    %c0_i32 = arith.constant 0 : i32
    %0 = arith.cmpi eq, %arg1, %c0_i32 : i32
    %1 = arith.extui %0 : i1 to i32
    %c0_i32_0 = arith.constant 0 : i32
    %2 = arith.cmpi ne, %1, %c0_i32_0 : i32
    scf.if %2 {
      %cst_27 = arith.constant 0.000000e+00 : f32
      %66 = vector.broadcast %cst_27 : f32 to vector<1x1xf32>
      %c0_28 = arith.constant 0 : index
      %c0_29 = arith.constant 0 : index
      %67 = vector.load %arg7[%c0_28, %c0_29] : memref<1x1xf32, #tpu.memory_space<vmem>>, vector<1x1xf32>
      tpu.vector_store %arg7[%c0_28, %c0_29], %66 {strides = array<i32>} : memref<1x1xf32, #tpu.memory_space<vmem>>, vector<1x1xf32>,
      %cst_30 = arith.constant 0.000000e+00 : f32
      %68 = vector.broadcast %cst_30 : f32 to vector<1x1x128xf32>
      %c0_31 = arith.constant 0 : index
      %c0_32 = arith.constant 0 : index
      %c0_33 = arith.constant 0 : index
      %69 = vector.load %arg6[%c0_31, %c0_32, %c0_33] : memref<1x1x128xf32, #tpu.memory_space<vmem>>, vector<1x1x128xf32>
      tpu.vector_store %arg6[%c0_31, %c0_32, %c0_33], %68 {strides = array<i32>} : memref<1x1x128xf32, #tpu.memory_space<vmem>>, vector<1x1x128xf32>,
    } else {
    }
    %c0 = arith.constant 0 : index
    %c0_1 = arith.constant 0 : index
    %c0_2 = arith.constant 0 : index
    %3 = vector.load %arg2[%c0, %c0_1, %c0_2] : memref<1x8x256xf32, #tpu.memory_space<vmem>>, vector<1x8x256xf32>
    %4 = vector.shape_cast %3 : vector<1x8x256xf32> to vector<8x256xf32>
    %c0_3 = arith.constant 0 : index
    %c0_4 = arith.constant 0 : index
    %c0_5 = arith.constant 0 : index
    %5 = vector.load %arg3[%c0_3, %c0_4, %c0_5] : memref<1x8x256xbf16, #tpu.memory_space<vmem>>, vector<1x8x256xbf16>
    %6 = vector.shape_cast %5 : vector<1x8x256xbf16> to vector<8x256xbf16>
    %c0_6 = arith.constant 0 : index
    %c0_7 = arith.constant 0 : index
    %7 = vector.load %arg4[%c0_6, %c0_7] : memref<256x256xbf16, #tpu.memory_space<vmem>>, vector<256x256xbf16>
    %cst = arith.constant dense<0.000000e+00> : vector<8x256xf32>
    %8 = tpu.matmul %6, %7, %cst {dimension_numbers = #tpu.dot_dimension_numbers<[1], [0], [0], [1], [0, 0, 1, 1], [], []>} : vector<8x256xbf16>, vector<256x256xbf16>, vector<8x256xf32> -> vector<8x256xf32>
    %9 = vector.extract_strided_slice %8 {offsets = [0, 255], sizes = [8, 1], strides = [1, 1]} : vector<8x256xf32> to vector<8x1xf32>
    %10 = vector.shape_cast %9 : vector<8x1xf32> to vector<8x1xf32>
    %11 = vector.broadcast %10 : vector<8x1xf32> to vector<8x128xf32>
    %12 = arith.truncf %11 : vector<8x128xf32> to vector<8x128xbf16>
    %c0_8 = arith.constant 0 : index
    %c0_9 = arith.constant 0 : index
    %13 = vector.load %arg5[%c0_8, %c0_9] : memref<8x8xbf16, #tpu.memory_space<vmem>>, vector<8x8xbf16>
    %cst_10 = arith.constant dense<0.000000e+00> : vector<8x128xf32>
    %14 = tpu.matmul %13, %12, %cst_10 {dimension_numbers = #tpu.dot_dimension_numbers<[1], [0], [0], [1], [0, 0, 1, 1], [], []>} : vector<8x8xbf16>, vector<8x128xbf16>, vector<8x128xf32> -> vector<8x128xf32>
    %15 = vector.extract_strided_slice %14 {offsets = [0, 0], sizes = [8, 1], strides = [1, 1]} : vector<8x128xf32> to vector<8x1xf32>
    %c0_11 = arith.constant 0 : index
    %c0_12 = arith.constant 0 : index
    %16 = vector.load %arg7[%c0_11, %c0_12] : memref<1x1xf32, #tpu.memory_space<vmem>>, vector<1x1xf32>
    %17 = vector.broadcast %16 : vector<1x1xf32> to vector<8x1xf32>
    %18 = arith.addf %15, %17 : vector<8x1xf32>
    %19 = vector.broadcast %18 : vector<8x1xf32> to vector<8x256xf32>
    %20 = arith.addf %8, %19 : vector<8x256xf32>
    %21 = tpu.iota {dimensions = array<i32: 1>} : vector<8x256xi32>
    %22 = arith.sitofp %21 : vector<8x256xi32> to vector<8x256xf32>
    %23 = tpu.iota {dimensions = array<i32: 0>} : vector<8x1xi32>
    %c256_i32 = arith.constant 256 : i32
    %24 = vector.broadcast %c256_i32 : i32 to vector<8x1xi32>
    %25 = arith.muli %23, %24 : vector<8x1xi32>
    %26 = arith.sitofp %25 : vector<8x1xi32> to vector<8x1xf32>
    %c2048_i32 = arith.constant 2048 : i32
    %27 = arith.muli %arg1, %c2048_i32 : i32
    %c1_i32 = arith.constant 1 : i32
    %28 = arith.addi %27, %c1_i32 : i32
    %29 = arith.sitofp %28 : i32 to f32
    %30 = vector.broadcast %29 : f32 to vector<8x1xf32>
    %31 = arith.addf %26, %30 : vector<8x1xf32>
    %32 = vector.broadcast %31 : vector<8x1xf32> to vector<8x256xf32>
    %33 = arith.addf %22, %32 : vector<8x256xf32>
    %34 = arith.extf %6 : vector<8x256xbf16> to vector<8x256xf32>
    %cst_13 = arith.constant 2.560000e+02 : f32
    %35 = vector.broadcast %cst_13 : f32 to vector<8x256xf32>
    %36 = arith.subf %35, %20 : vector<8x256xf32>
    %37 = arith.addf %36, %33 : vector<8x256xf32>
    %cst_14 = arith.constant 1.000000e+00 : f32
    %38 = vector.broadcast %cst_14 : f32 to vector<8x256xf32>
    %39 = arith.subf %34, %38 : vector<8x256xf32>
    %40 = arith.addf %37, %39 : vector<8x256xf32>
    %cst_15 = arith.constant 1.000000e+00 : f32
    %41 = vector.broadcast %cst_15 : f32 to vector<8x256xf32>
    %42 = arith.cmpf ole, %33, %41 : vector<8x256xf32>
    %43 = arith.mulf %34, %33 : vector<8x256xf32>
    %44 = arith.addf %43, %36 : vector<8x256xf32>
    %45 = arith.select %42, %40, %44 : vector<8x256xi1>, vector<8x256xf32>
    %46 = arith.mulf %37, %40 : vector<8x256xf32>
    %47 = arith.divf %45, %46 : vector<8x256xf32>
    %cst_16 = arith.constant 0.000000e+00 : f32
    %48 = vector.broadcast %cst_16 : f32 to vector<8x256xf32>
    %49 = arith.maximumf %4, %48 : vector<8x256xf32>
    %50 = arith.mulf %49, %47 : vector<8x256xf32>
    %51 = vector.shape_cast %50 : vector<8x256xf32> to vector<1x8x256xf32>
    %cst_17 = arith.constant dense<0.000000e+00> : vector<1xf32>
    %52 = vector.multi_reduction <add>, %51, %cst_17 [1, 2] : vector<1x8x256xf32> to vector<1xf32>
    %53 = vector.shape_cast %52 : vector<1xf32> to vector<1x1x1xf32>
    %54 = vector.extract %53[0, 0, 0] : f32 from vector<1x1x1xf32>
    %c0_18 = arith.constant 0 : index
    %c0_19 = arith.constant 0 : index
    %c0_20 = arith.constant 0 : index
    %55 = vector.load %arg6[%c0_18, %c0_19, %c0_20] : memref<1x1x128xf32, #tpu.memory_space<vmem>>, vector<1x1x128xf32>
    %56 = vector.broadcast %54 : f32 to vector<1x1x128xf32>
    %57 = arith.addf %55, %56 : vector<1x1x128xf32>
    %c0_21 = arith.constant 0 : index
    %c0_22 = arith.constant 0 : index
    %c0_23 = arith.constant 0 : index
    %58 = vector.load %arg6[%c0_21, %c0_22, %c0_23] : memref<1x1x128xf32, #tpu.memory_space<vmem>>, vector<1x1x128xf32>
    tpu.vector_store %arg6[%c0_21, %c0_22, %c0_23], %57 {strides = array<i32>} : memref<1x1x128xf32, #tpu.memory_space<vmem>>, vector<1x1x128xf32>,
    %59 = vector.shape_cast %9 : vector<8x1xf32> to vector<1x8x1xf32>
    %cst_24 = arith.constant dense<0.000000e+00> : vector<1xf32>
    %60 = vector.multi_reduction <add>, %59, %cst_24 [1, 2] : vector<1x8x1xf32> to vector<1xf32>
    %61 = vector.shape_cast %60 : vector<1xf32> to vector<1x1x1xf32>
    %62 = vector.extract %61[0, 0, 0] : f32 from vector<1x1x1xf32>
    %63 = vector.broadcast %62 : f32 to vector<1x1xf32>
    %64 = arith.addf %16, %63 : vector<1x1xf32>
    %c0_25 = arith.constant 0 : index
    %c0_26 = arith.constant 0 : index
    %65 = vector.load %arg7[%c0_25, %c0_26] : memref<1x1xf32, #tpu.memory_space<vmem>>, vector<1x1xf32>
    tpu.vector_store %arg7[%c0_25, %c0_26], %64 {strides = array<i32>} : memref<1x1xf32, #tpu.memory_space<vmem>>, vector<1x1xf32>,
    return
  }
  func.func @transform_0(%arg0: i32, %arg1: i32) -> (i32, i32, i32) {
    %c0_i32 = arith.constant 0 : i32
    %c0_i32_0 = arith.constant 0 : i32
    return %arg0, %arg1, %c0_i32 : i32, i32, i32
  }
  func.func @transform_1(%arg0: i32, %arg1: i32) -> (i32, i32, i32) {
    %c0_i32 = arith.constant 0 : i32
    %c0_i32_0 = arith.constant 0 : i32
    return %arg0, %arg1, %c0_i32 : i32, i32, i32
  }
  func.func @transform_2(%arg0: i32, %arg1: i32) -> (i32, i32) {
    %c0_i32 = arith.constant 0 : i32
    %c0_i32_0 = arith.constant 0 : i32
    %c0_i32_1 = arith.constant 0 : i32
    return %c0_i32, %c0_i32_0 : i32, i32
  }
  func.func @transform_3(%arg0: i32, %arg1: i32) -> (i32, i32) {
    %c0_i32 = arith.constant 0 : i32
    %c0_i32_0 = arith.constant 0 : i32
    %c0_i32_1 = arith.constant 0 : i32
    return %c0_i32, %c0_i32_0 : i32, i32
  }
  func.func @transform_4(%arg0: i32, %arg1: i32) -> (i32, i32, i32) {
    %c0_i32 = arith.constant 0 : i32
    %c0_i32_0 = arith.constant 0 : i32
    %c0_i32_1 = arith.constant 0 : i32
    return %arg0, %c0_i32, %c0_i32_0 : i32, i32, i32
  }
}

</mosaic_0001>

<bundles_post_ra>
// kernel: neg.3
= control target key start
LH: loop header
LB: loop body
LE: loop exit
PB: predicated region body
PF: predicated region fallthrough
CT: control target
= control target key end

     0   :  { %s136_s0 = inlined_call_operand.vmem [shape: f32[2,1024], index: 0, kind: input, shape index: {}]   ;;  %s137_s1 = inlined_call_operand.vmem [shape: f32[2,1024], index: 1, kind: output, shape index: {}]  }
   0x1   :  { %v2_v0 = vld [vmem:[%s136_s0] sm:$0x3]  ;;  %v64_v1 = vld [vmem:[%s136_s0 + $0x2] sm:$0x3]  ;;  %v66_v2 = vld [vmem:[%s136_s0 + $0x4] sm:$0x3] }
   0x2   :  { %v5_v3 = vxor.u32 2147483648, %v2_v0  ;;  %v12_v4 = vxor.u32 2147483648, %v64_v1  ;;  %v20_v5 = vxor.u32 2147483648, %v66_v2  ;;  %v68_v6 = vld [vmem:[%s136_s0 + $0x6] sm:$0x3] }
   0x3   :  { %v28_v7 = vxor.u32 2147483648, %v68_v6  ;;  %v70_v8 = vld [vmem:[%s136_s0 + $0x8] sm:$0x3]  ;;  %v72_v9 = vld [vmem:[%s136_s0 + $0xa] sm:$0x3] }
   0x4   :  { %7 = vst [vmem:[%s137_s1] sm:$0x3] %v5_v3  ;;  %65 = vst [vmem:[%s137_s1 + $0x2] sm:$0x3] %v12_v4  ;;  %v36_v10 = vxor.u32 2147483648, %v70_v8  ;;  %v44_v11 = vxor.u32 2147483648, %v72_v9 }
   0x5   :  { %67 = vst [vmem:[%s137_s1 + $0x4] sm:$0x3] %v20_v5  ;;  %v74_v12 = vld [vmem:[%s136_s0 + $0xc] sm:$0x3]  ;;  %v76_v13 = vld [vmem:[%s136_s0 + $0xe] sm:$0x3] }
   0x6   :  { %69 = vst [vmem:[%s137_s1 + $0x6] sm:$0x3] %v28_v7  ;;  %v52_v14 = vxor.u32 2147483648, %v74_v12  ;;  %v60_v15 = vxor.u32 2147483648, %v76_v13  ;;  %71 = vst [vmem:[%s137_s1 + $0x8] sm:$0x3] %v36_v10 }
   0x7   :  { %73 = vst [vmem:[%s137_s1 + $0xa] sm:$0x3] %v44_v11 }
   0x8   :  { %75 = vst [vmem:[%s137_s1 + $0xc] sm:$0x3] %v52_v14  ;;  %77 = vst [vmem:[%s137_s1 + $0xe] sm:$0x3] %v60_v15 }

// kernel: lovasz_loss.2
= control target key start
LH: loop header
LB: loop body
LE: loop exit
PB: predicated region body
PF: predicated region fallthrough
CT: control target
= control target key end

     0   :  { %s557_s12 = smov 0   ;;  %s559_s13 = smov 0   ;;  %s596_s0 = inlined_call_operand.vmem [shape: f32[2,4,256], index: 0, kind: input, shape index: {}]   ;;  %s597_s1 = inlined_call_operand.vmem [shape: s32[2,1,256], index: 1, kind: input, shape index: {}]   ;;  %s598_s2 = inlined_call_operand.vmem [shape: f32[2,4,256], index: 2, kind: output, shape index: {0}]   ;;  %s599_s3 = inlined_call_operand.vmem [shape: bf16[2,4,256], index: 3, kind: output, shape index: {1}]  }
   0x1   :  { %s561_s14 = smov 0  }
   0x2 LB: > { %s26_s15 = sadd.s32 1, %s530_s13  ;;  %p470_p0 = scmp.ge.s32.totalorder %s534_s14, 1  ;;  %s534_s14 = sphi %s561_s14, %s14_s14   ;;  %s530_s13 = sphi %s559_s13, %s601_s13   ;;  %s526_s12 = sphi %s557_s12, %s600_s12  }
   0x3   : > { %p28_p1 = scmp.ge.s32.totalorder %s26_s15, 2  ;;  %p179_p2 = scmp.lt.s32.totalorder %s534_s14, 3 }
   0x5   : > { %s603_s15 = smov (%p28_p1, %s26_s15), 0  ;;  %p180_p3 = pnand %p470_p0, %p179_p2 }
   0x6   : > { %p229_p4 = scmp.lt.s32.totalorder (!%p180_p3), %s526_s12, 1  ;;  %v269_v0 = vlaneseq (!%p180_p3)  ;;  %v536_v13 = vmov (!%p180_p3), 0.0  }
   0x7   : > { %183 = sbr.rel (%p180_p3) target bundleno = 26 (0x1a), region = 28 }
   0x8   : > { %v270_v1 = vshrl.u32 (!%p180_p3), %v269_v0, 7 }
   0xa   : > { %v273_v2 = vsub.s32 (!%p180_p3), 0, %v270_v1  ;;  %v277_v3 = vsub.s32 (!%p180_p3), 1, %v270_v1 }
   0xe   : > { %s605_s12 = smov (!%p229_p4, %s526_s12), 1 }
   0xf   : > { %s484_s16 = sshll.u32 %s605_s12, 3  ;;  %s473_s17 = sshll.u32 %s605_s12, 1 }
  0x10   : > { %s236_s20 = scalar_lea.vmem %s596_s0, %s484_s16  ;;  %s245_s23 = scalar_lea.vmem %s597_s1, %s473_s17 }
  0x11   : > { %v267_v4 = vld [vmem:[%s236_s20] sm:$0xff]  ;;  %s486_s24 = sshll.u32 %s605_s12, 2  ;;  %s255_s30 = scalar_lea.vmem %s598_s2, %s484_s16 }
  0x12   : > { %v268_v5 = vld [vmem:[%s245_s23] sm:$0x3]  ;;  %v281_v8 = vsub.f32 1.0, %v267_v4  ;;  %v282_v9 = vadd.f32 1.0, %v267_v4  ;;  %s265_s27 = scalar_lea.vmem %s599_s3, %s486_s24 }
  0x13   : > { %v274_v6 = vrot.slane %v268_v5, %v273_v2  ;;  %v278_v7 = vrot.slane %v268_v5, %v277_v3 }
  0x14   : > { %v284_v10 = vcombine.high %v281_v8, %v281_v8  ;;  %v287_v11 = vcombine.high %v282_v9, %v282_v9 }
  0x15   : > { %vm279_vm0 = vcmp.eq.s32.totalorder %v270_v1, %v274_v6  ;;  %vm280_vm1 = vcmp.eq.s32.totalorder %v270_v1, %v278_v7 }
  0x16   : > { %v289_v12 = vsel %vm279_vm0, %v281_v8, %v282_v9  ;;  %v478_v14 = vsel %vm279_vm0, 1.0, %v536_v13  ;;  %v479_v15 = vsel %vm280_vm1, 1.0, %v536_v13  ;;  %v290_v16 = vsel %vm280_vm1, %v284_v10, %v287_v11 }
  0x17   : > { %v480_v17 = vpack.c.bf16 %v479_v15, %v478_v14  ;;  %v293_v18 = vcombine.low %v289_v12, %v290_v16 }
  0x19   : > { %481 = vst.sshfl [vmem:[%s265_s27] sm:$0x33 pattern:$0x76325410] %v480_v17  ;;  %295 = vst [vmem:[%s255_s30] sm:$0xff] %v293_v18 }
  0x1a PF: > { %s14_s14 = sadd.s32 1, %s534_s14   ;;  %s600_s12 = smov %s530_s13 }
  0x1b   : > { %p11_p5 = scmp.ge.s32.totalorder %s14_s14, 4   ;;  %s601_s13 = smov %s603_s15 }
  0x1d   :  { %13 = sbr.rel (!%p11_p5) target bundleno = 2 (0x2), region = 73 }

// kernel: lovasz_loss.3
= control target key start
LH: loop header
LB: loop body
LE: loop exit
PB: predicated region body
PF: predicated region fallthrough
CT: control target
= control target key end

     0   :  { %s937_s15 = smov 0   ;;  %s939_s16 = smov 0   ;;  %s1095_s0 = inlined_call_operand.vmem [shape: f32[2,8,256], index: 0, kind: input, shape index: {}]   ;;  %s1096_s1 = inlined_call_operand.vmem [shape: bf16[2,8,256], index: 1, kind: input, shape index: {}]   ;;  %s1097_s2 = inlined_call_operand.vmem [shape: bf16[256,256], index: 2, kind: input, shape index: {}]   ;;  %s1098_s3 = inlined_call_operand.vmem [shape: bf16[8,8], index: 3, kind: input, shape index: {}]   ;;  %s1099_s4 = inlined_call_operand.vmem [shape: f32[2,1,128], index: 4, kind: output, shape index: {}]  }
   0x1   :  { %s941_s17 = smov 0  }
   0x2 LB: > { %s26_s18 = sadd.s32 1, %s901_s16  ;;  %p740_p0 = scmp.ge.s32.totalorder %s905_s17, 1  ;;  %s905_s17 = sphi %s941_s17, %s14_s17   ;;  %s901_s16 = sphi %s939_s16, %s1101_s16   ;;  %s897_s15 = sphi %s937_s15, %s1100_s15  }
   0x3   : > { %p28_p1 = scmp.ge.s32.totalorder %s26_s18, 2  ;;  %p196_p2 = scmp.lt.s32.totalorder %s905_s17, 3 }
   0x5   : > { %s1103_s18 = smov (%p28_p1, %s26_s18), 0  ;;  %p197_p3 = pnand %p740_p0, %p196_p2 }
   0x6   : > { %v829_v0 = vld [vmem:[%s1097_s2 + $0x4] ss:$8 sps:$4 sm:$0xff] (!%p197_p3)   ;;  %v831_v1 = vld [vmem:[%s1097_s2] ss:$8 sps:$4 sm:$0xff] (!%p197_p3)   ;;  %v832_v2 = vld [vmem:[%s1097_s2 + $0x14] ss:$8 sps:$4 sm:$0xff] (!%p197_p3)   ;;  %v562_v46 = vlaneseq (!%p197_p3) }
   0x7   : > { %200 = sbr.rel (%p197_p3) target bundleno = 997 (0x3e5), region = 36  ;;  %464 = vmatprep.subr.bf16.mxu0 (!%p197_p3), %v829_v0  ;;  %v834_v3 = vld [vmem:[%s1097_s2 + $0x10] ss:$8 sps:$4 sm:$0xff] (!%p197_p3)   ;;  %v835_v4 = vld [vmem:[%s1097_s2 + $0x24] ss:$8 sps:$4 sm:$0xff] (!%p197_p3)   ;;  %p233_p4 = scmp.lt.s32.totalorder (!%p197_p3), %s897_s15, 1 }
   0x8   : > { %465 = vmatpush1.bf16.msra.mxu0 (!%p197_p3), %v831_v1  ;;  %v837_v5 = vld [vmem:[%s1097_s2 + $0x20] ss:$8 sps:$4 sm:$0xff] (!%p197_p3)   ;;  %v838_v6 = vld [vmem:[%s1097_s2 + $0x34] ss:$8 sps:$4 sm:$0xff] (!%p197_p3)   ;;  %v840_v7 = vld [vmem:[%s1097_s2 + $0x30] ss:$8 sps:$4 sm:$0xff] (!%p197_p3)  }
   0x9   : > { %466 = vmatprep.subr.bf16.mxu0 (!%p197_p3), %v832_v2  ;;  %v841_v8 = vld [vmem:[%s1097_s2 + $0x44] ss:$8 sps:$4 sm:$0xff] (!%p197_p3)   ;;  %v843_v9 = vld [vmem:[%s1097_s2 + $0x40] ss:$8 sps:$4 sm:$0xff] (!%p197_p3)   ;;  %v844_v10 = vld [vmem:[%s1097_s2 + $0x54] ss:$8 sps:$4 sm:$0xff] (!%p197_p3)  }
   0xa   : > { %v846_v11 = vld [vmem:[%s1097_s2 + $0x50] ss:$8 sps:$4 sm:$0xff] (!%p197_p3)   ;;  %v847_v12 = vld [vmem:[%s1097_s2 + $0x64] ss:$8 sps:$4 sm:$0xff] (!%p197_p3)   ;;  %v849_v15 = vld [vmem:[%s1097_s2 + $0x60] ss:$8 sps:$4 sm:$0xff] (!%p197_p3)  }
   0xb   : > { %v850_v16 = vld [vmem:[%s1097_s2 + $0x74] ss:$8 sps:$4 sm:$0xff] (!%p197_p3)   ;;  %v852_v17 = vld [vmem:[%s1097_s2 + $0x70] ss:$8 sps:$4 sm:$0xff] (!%p197_p3)   ;;  %v853_v18 = vld [vmem:[%s1097_s2 + $0x84] ss:$8 sps:$4 sm:$0xff] (!%p197_p3)  }
   0xc   : > { %467 = vmatpush1.bf16.msra.mxu0 (!%p197_p3), %v834_v3  ;;  %v855_v19 = vld [vmem:[%s1097_s2 + $0x80] ss:$8 sps:$4 sm:$0xff] (!%p197_p3)   ;;  %v856_v20 = vld [vmem:[%s1097_s2 + $0x94] ss:$8 sps:$4 sm:$0xff] (!%p197_p3)   ;;  %v858_v21 = vld [vmem:[%s1097_s2 + $0x90] ss:$8 sps:$4 sm:$0xff] (!%p197_p3)  }
   0xd   : > { %468 = vmatprep.subr.bf16.mxu0 (!%p197_p3), %v835_v4  ;;  %v859_v22 = vld [vmem:[%s1097_s2 + $0xa4] ss:$8 sps:$4 sm:$0xff] (!%p197_p3)   ;;  %v861_v23 = vld [vmem:[%s1097_s2 + $0xa0] ss:$8 sps:$4 sm:$0xff] (!%p197_p3)   ;;  %v862_v24 = vld [vmem:[%s1097_s2 + $0xb4] ss:$8 sps:$4 sm:$0xff] (!%p197_p3)  }
   0xe   : > { %s1105_s15 = smov (!%p233_p4, %s897_s15), 1  ;;  %v864_v25 = vld [vmem:[%s1097_s2 + $0xb0] ss:$8 sps:$4 sm:$0xff]   ;;  %v865_v26 = vld [vmem:[%s1097_s2 + $0xc4] ss:$8 sps:$4 sm:$0xff]   ;;  %v907_v35 = vmov 127  }
   0xf   : > { %s785_s13 = sshll.u32 %s1105_s15, 3  ;;  %v867_v27 = vld [vmem:[%s1097_s2 + $0xc0] ss:$8 sps:$4 sm:$0xff]   ;;  %v868_v28 = vld [vmem:[%s1097_s2 + $0xd4] ss:$8 sps:$4 sm:$0xff]   ;;  %827 = vset.pattern.permute.xlu0 %v907_v35  ;;  %s908_s21 = smov 1  }
  0x10   : > { %469 = vmatpush1.bf16.msra.mxu0 %v837_v5  ;;  %s250_s22 = scalar_lea.vmem %s1096_s1, %s785_s13  ;;  %v870_v29 = vld [vmem:[%s1097_s2 + $0xd0] ss:$8 sps:$4 sm:$0xff]   ;;  %v871_v30 = vld [vmem:[%s1097_s2 + $0xe4] ss:$8 sps:$4 sm:$0xff]   ;;  %v873_v31 = vld [vmem:[%s1097_s2 + $0xe0] ss:$8 sps:$4 sm:$0xff]   ;;  %s253_s30 = scalar_lea.vmem %s1099_s4, %s1105_s15 }
  0x11   : > { %470 = vmatprep.subr.bf16.mxu0 %v838_v6  ;;  %v1000_v13 = vld [vmem:[%s250_s22] sm:$0xff]  ;;  %v874_v32 = vld [vmem:[%s1097_s2 + $0xf4] ss:$8 sps:$4 sm:$0xff]   ;;  %v876_v33 = vld [vmem:[%s1097_s2 + $0xf0] ss:$8 sps:$4 sm:$0xff]   ;;  %vm259_vm0 = vcmask 0  }
  0x12   : > { %v746_v14 = vcombine.high %v1000_v13, %v1000_v13  ;;  %v745_v34 = vcombine.low %v1000_v13, %v1000_v13  ;;  %v909_v40 = vmov 0.0   ;;  %vm910_vm1 = vmmov 0   ;;  %v511_v44 = vld [vmem:[%s1098_s3] sm:$0xf]  ;;  %s784_s24 = sshll.u32 %s1105_s15, 4 }
  0x13   : > { %260 = vst.msk [vmem:[#allocation2] sm:$0x1] %vm259_vm0, %v909_v40  ;;  %788 = vmatprep.subr.bf16.mxu1 %v909_v40  ;;  %790 = vmatprep.mubr.msk.bf16.mxu1 %vm910_vm1, %v909_v40  ;;  %vm516_vm2 = vcmask 1043456   ;;  %vm512_vm3 = vcmask 64512   ;;  %v911_v45 = vmov 0   ;;  %v563_v47 = vshrl.u32 %v562_v46, 7  ;;  %s241_s27 = scalar_lea.vmem %s1095_s0, %s784_s24 }
  0x14   : > { %471 = vmatpush1.bf16.msra.mxu0 %v840_v7  ;;  %496 = vmatprep.mubr.bf16.mxu0 %v746_v14  ;;  %v576_v50 = vand.u32 127, %v562_v46  ;;  %v591_v52 = vunpack.c.l.bf16 %v1000_v13  ;;  %v592_v55 = vunpack.c.h.bf16 %v1000_v13  ;;  %vm636_vm4 = vcmask 7168   ;;  %261 = vst [vmem:[%s253_s30] sm:$0x1] %v909_v40 }
  0x15   : > { %472 = vmatprep.subr.bf16.mxu0 %v841_v8  ;;  %v582_v48 = vmul.u32 256, %v563_v47  ;;  %v564_v61 = vsub.s32 0, %v563_v47 }
  0x16   : > { %v577_v53 = vadd.s32 128, %v576_v50  ;;  %v578_v54 = vcvt.s32.f32 %v576_v50 }
  0x17   : > { %v583_v49 = vcvt.s32.f32 %v582_v48 }
  0x18   : > { %473 = vmatpush1.bf16.msra.mxu0 %v843_v9  ;;  %v579_v56 = vcvt.s32.f32 %v577_v53 }
  0x19   : > { %474 = vmatprep.subr.bf16.mxu0 %v844_v10  ;;  %v588_v51 = vadd.f32 1.0, %v583_v49  ;;  %v780_v10 = vadd.f32 -1.0, %v591_v52 }
  0x1a   : > { %v1072_v62 = vld [vmem:[#allocation2] sm:$0x1] }
  0x1b   : > { %v589_v57 = vadd.f32 %v588_v51, %v578_v54  ;;  %v590_v58 = vadd.f32 %v588_v51, %v579_v56  ;;  %v565_v63 = vrot.slane %v1072_v62, %v564_v61  ;;  %v629_v50 = vld [vmem:[%s253_s30] sm:$0x1] }
  0x1c   : > { %475 = vmatpush1.bf16.msra.mxu0 %v846_v11  ;;  %v781_v11 = vadd.f32 -1.0, %v592_v55 }
  0x1d   : > { %476 = vmatprep.subr.bf16.mxu0 %v847_v12  ;;  %v603_v59 = vmul.f32 %v591_v52, %v589_v57  ;;  %v604_v60 = vmul.f32 %v592_v55, %v590_v58  ;;  %vm601_vm5 = vcmp.le.f32.partialorder %v589_v57, 1.0  ;;  %vm602_vm6 = vcmp.le.f32.partialorder %v590_v58, 1.0 }
  0x20   : > { %477 = vmatpush1.bf16.msra.mxu0 %v849_v15 }
  0x21   : > { %478 = vmatprep.subr.bf16.mxu0 %v850_v16 }
  0x24   : > { %479 = vmatpush1.bf16.msra.mxu0 %v852_v17 }
  0x25   : > { %480 = vmatprep.subr.bf16.mxu0 %v853_v18 }
  0x28   : > { %481 = vmatpush1.bf16.msra.mxu0 %v855_v19 }
  0x29   : > { %482 = vmatprep.subr.bf16.mxu0 %v856_v20 }
  0x2c   : > { %483 = vmatpush1.bf16.msra.mxu0 %v858_v21 }
  0x2d   : > { %484 = vmatprep.subr.bf16.mxu0 %v859_v22 }
  0x30   : > { %485 = vmatpush1.bf16.msra.mxu0 %v861_v23 }
  0x31   : > { %486 = vmatprep.subr.bf16.mxu0 %v862_v24  ;;  %v262_v24 = vld [vmem:[%s241_s27] sm:$0xff] }
  0x34   : > { %487 = vmatpush1.bf16.msra.mxu0 %v864_v25  ;;  %v263_v25 = vld [vmem:[%s241_s27 + $0x8] sm:$0xff] }
  0x35   : > { %488 = vmatprep.subr.bf16.mxu0 %v865_v26  ;;  %v615_v26 = vmax.f32 %v262_v24, 0.0 }
  0x38   : > { %489 = vmatpush1.bf16.msra.mxu0 %v867_v27 }
  0x39   : > { %490 = vmatprep.subr.bf16.mxu0 %v868_v28  ;;  %v616_v28 = vmax.f32 %v263_v25, 0.0 }
  0x3c   : > { %491 = vmatpush1.bf16.msra.mxu0 %v870_v29 }
  0x3d   : > { %492 = vmatprep.subr.bf16.mxu0 %v871_v30 }
  0x40   : > { %493 = vmatpush1.bf16.msra.mxu0 %v873_v31 }
  0x41   : > { %494 = vmatprep.subr.bf16.mxu0 %v874_v32 }
  0x44   : > { %495 = vmatpush1.bf16.msra.mxu0 %v876_v33 }
  0x47   : > { %497 = vmatmul.mubr.bf16.vlgmr.msra.gmra.mrb[0].mxu0 %v745_v34 }
 0x11a   : > { %v498_v36 = vpop.f32.mrb[0].mxu0 }
 0x11b   : > { %v500_v37 = vpop.f32.mrb[1].mxu0 }
 0x11c   : > { %633 = vrot.lane.b32.xlu1 %v500_v37, %s908_s21  ;;  %507 = vperm.xlu0 %827, %v500_v37   ;;  %v502_v38 = vpop.f32.mrb[2].mxu0 }
 0x11d   : > { %v503_v39 = vpop.f32.mrb[3].mxu0 }
 0x120   : > { %828 = vset.pattern.permute.xlu0 %v911_v45 }
 0x18e   : > { %v634_v5 = vpop.permute.xlu1 %633 }
 0x18f   : > { %v637_v6 = vsel %vm636_vm4, %v634_v5, 0.0 }
 0x19b   : > { %v508_v41 = vpop.permute.xlu0 %507 }
 0x19c   : > { %v510_v42 = vpack.c.bf16 %v508_v41, %v508_v41 }
 0x19e   : > { %v518_v43 = vsel %vm516_vm2, %v510_v42, 0 }
 0x19f   : > { %789 = vmatpush3.bf16.msra.mxu1 %v518_v43 }
 0x1a2   : > { %791 = vmatmul.mubr.msk.bf16.vlgmr.msra.gmra.mrb[0].mxu1 %vm512_vm3, %v511_v44 }
 0x275   : > { %v554_v0 = vpop.f32.mrb[0].mxu1 }
 0x276   : > { %v567_v1 = vadd.f32 %v565_v63, %v554_v0  ;;  %v792_v2 = vpop.f32.mrb[1].mxu1 }
 0x277   : > { %v557_v3 = vpop.f32.mrb[2].mxu1 }
 0x278   : > { %570 = vperm.xlu0 %828, %v567_v1   ;;  %v793_v4 = vpop.f32.mrb[3].mxu1 }
 0x297   : > { %638 = vadd.xlane.f32.xlu0 %v637_v6 }
 0x2f7   : > { %v571_v7 = vpop.permute.xlu0 %570 }
 0x2f8   : > { %v573_v8 = vadd.f32 %v571_v7, %v498_v36  ;;  %v574_v9 = vadd.f32 %v571_v7, %v500_v37 }
 0x2fa   : > { %v593_v12 = vsub.f32 256.0, %v573_v8  ;;  %v594_v13 = vsub.f32 256.0, %v574_v9 }
 0x2fc   : > { %v595_v14 = vadd.f32 %v593_v12, %v589_v57  ;;  %v596_v15 = vadd.f32 %v594_v13, %v590_v58  ;;  %v605_v16 = vadd.f32 %v603_v59, %v593_v12  ;;  %v606_v17 = vadd.f32 %v604_v60, %v594_v13 }
 0x2fe   : > { %v599_v18 = vadd.f32 %v780_v10, %v595_v14  ;;  %v600_v19 = vadd.f32 %v781_v11, %v596_v15 }
 0x300   : > { %v609_v20 = vmul.f32 %v599_v18, %v595_v14  ;;  %v610_v21 = vmul.f32 %v600_v19, %v596_v15  ;;  %v607_v22 = vsel %vm601_vm5, %v599_v18, %v605_v16  ;;  %v608_v23 = vsel %vm602_vm6, %v600_v19, %v606_v17 }
 0x302   : > { %879 = vrcp.f32 %v609_v20 }
 0x303   : > { %881 = vrcp.f32 %v610_v21 }
 0x30c   : > { %v880_v27 = vpop.eup %879 }
 0x30d   : > { %v882_v29 = vpop.eup %881  ;;  %v612_v30 = vmul.f32 %v880_v27, %v607_v22 }
 0x30e   : > { %v614_v31 = vmul.f32 %v882_v29, %v608_v23 }
 0x30f   : > { %v617_v32 = vmul.f32 %v615_v26, %v612_v30 }
 0x310   : > { %v618_v33 = vmul.f32 %v616_v28, %v614_v31 }
 0x312   : > { %v619_v34 = vadd.f32 %v618_v33, %v617_v32 }
 0x314   : > { %620 = vadd.xlane.f32.xlu1 %v619_v34 }
 0x324   : > { %v639_v35 = vpop.xlane.xlu0 %638 }
 0x325   : > { %v640_v36 = vrot.slane %v639_v35, 4 }
 0x327   : > { %v641_v37 = vadd.f32 %v640_v36, %v639_v35 }
 0x329   : > { %v642_v38 = vrot.slane %v641_v37, 2 }
 0x32b   : > { %v643_v43 = vadd.f32 %v642_v38, %v641_v37 }
 0x32d   : > { %v644_v46 = vrot.slane %v643_v43, 1 }
 0x32f   : > { %v645_v49 = vadd.f32 %v644_v46, %v643_v43 }
 0x3a1   : > { %v621_v39 = vpop.xlane.xlu1 %620 }
 0x3a2   : > { %v622_v41 = vrot.slane %v621_v39, 4 }
 0x3a4   : > { %v623_v42 = vadd.f32 %v622_v41, %v621_v39 }
 0x3a6   : > { %v624_v44 = vrot.slane %v623_v42, 2 }
 0x3a8   : > { %v625_v45 = vadd.f32 %v624_v44, %v623_v42 }
 0x3aa   : > { %v626_v47 = vrot.slane %v625_v45, 1 }
 0x3ac   : > { %v627_v48 = vadd.f32 %v626_v47, %v625_v45 }
 0x3ae   : > { %794 = vpush %v627_v48 }
 0x3af   : > { %796 = vpush %v645_v49 }
 0x3df   : > { %s795_s15 = spop %794 }
 0x3e0   : > { %v630_v51 = vstv %s795_s15  ;;  %s797_s5 = spop %796 }
 0x3e1   : > { %v631_v40 = vadd.f32 %v630_v51, %v629_v50  ;;  %v647_v52 = vstv %s797_s5 }
 0x3e2   : > { %v648_v53 = vadd.f32 %v647_v52, %v1072_v62 }
 0x3e3   : > { %632 = vst [vmem:[%s253_s30] sm:$0x1] %v631_v40 }
 0x3e4   : > { %650 = vst.msk [vmem:[#allocation2] sm:$0x1] %vm259_vm0, %v648_v53 }
 0x3e5 PF: > { %s14_s17 = sadd.s32 1, %s905_s17   ;;  %s1100_s15 = smov %s901_s16 }
 0x3e6   : > { %p11_p5 = scmp.ge.s32.totalorder %s14_s17, 4   ;;  %s1101_s16 = smov %s1103_s18 }
 0x3e8   :  { %13 = sbr.rel (!%p11_p5) target bundleno = 2 (0x2), region = 73 }

</bundles_post_ra>
